<compile_context>
chip_gen: v7x
topology: tpu7x:2x2x1
jax: 0.10.0
libtpu: 0.0.40
codegen_flags: <defaults>
</compile_context>

<pallas_src>
import jax
import jax.numpy as jnp
from jax.experimental import pallas as pl
from jax.experimental.pallas import tpu as pltpu

LANE = 128      # lane (last-dim) alignment
SUBLANE = 8     # sublane (second-to-last dim) alignment


def _round_up(x, m):
    return ((x + m - 1) // m) * m


# ---------------------------------------------------------------------------
# Fused 3-layer MLP kernel over a (head, batch-tile) grid.  Each grid step
# processes one head's weights (resident for that step) and one batch tile.
# x arrives as f32 and is cast to bf16 in-kernel; accumulation stays f32.
# ---------------------------------------------------------------------------
def _fused_mlp_kernel(x_ref, w1_ref, b1_ref, w2_ref, b2_ref, w3_ref, b3_ref, o_ref):
    cdt = w1_ref.dtype  # MXU operand dtype (bfloat16)
    x = x_ref[...].astype(cdt)

    # Layer 1: Linear + bias + ReLU   (Dropout(0.2) == identity in eval mode)
    h1 = jnp.dot(x, w1_ref[...], preferred_element_type=jnp.float32)
    h1 = jnp.maximum(h1 + b1_ref[...], 0.0).astype(cdt)

    # Layer 2: Linear + bias + ReLU   (Dropout == identity)
    h2 = jnp.dot(h1, w2_ref[...], preferred_element_type=jnp.float32)
    h2 = jnp.maximum(h2 + b2_ref[...], 0.0).astype(cdt)

    # Layer 3: Linear (logits, fusion weight already folded into w3/b3)
    out = jnp.dot(h2, w3_ref[...], preferred_element_type=jnp.float32)
    o_ref[...] = (out + b3_ref[...]).astype(o_ref.dtype)


def prepare_fusion_params(x1_params, x2_params, fusion_w1=1.0, fusion_w2=1.0,
                          compute_dtype=jnp.bfloat16):
    """Pad both heads' Linear params to lane-aligned shapes, fold the fusion
    weights into the last layer, and stack along a leading head axis."""
    D, H = x1_params[0].shape
    C = x1_params[4].shape[1]
    assert x2_params[0].shape == (D, H) and x2_params[4].shape == (H, C)
    Dp, Hp, Cp = _round_up(D, LANE), _round_up(H, LANE), _round_up(C, LANE)

    def pad_w(w, shape, scale=1.0):
        out = jnp.zeros(shape, compute_dtype)
        w = (w.astype(jnp.float32) * scale).astype(compute_dtype)
        return out.at[: w.shape[0], : w.shape[1]].set(w)

    def pad_b(b, n, scale=1.0):
        out = jnp.zeros((1, n), jnp.float32)
        return out.at[:, : b.shape[1]].set(b.astype(jnp.float32) * scale)

    def prep_head(params, scale):
        w1, b1, w2, b2, w3, b3 = params
        return (pad_w(w1, (Dp, Hp)), pad_b(b1, Hp),
                pad_w(w2, (Hp, Hp)), pad_b(b2, Hp),
                pad_w(w3, (Hp, Cp), scale), pad_b(b3, Cp, scale))

    h0 = prep_head(x1_params, fusion_w1)
    h1 = prep_head(x2_params, fusion_w2)
    stacked = tuple(jnp.stack([a, b], axis=0) for a, b in zip(h0, h1))
    return stacked, (D, H, C)


def fused_mlp_forward(text_embeds, image_embeds, prepared, *, batch_tile=512):
    """Run both MLP heads in one pallas_call. Returns (x1_logits, x2_logits) f32."""
    (w1, b1, w2, b2, w3, b3), (D, H, C) = prepared
    B = text_embeds.shape[0]
    Dp, Hp = w1.shape[1], w1.shape[2]
    Cp = w3.shape[2]

    # One big batch tile (single step per head) unless the batch is large;
    # the head axis already provides >=2 parallel grid steps for v7x.
    bt = _round_up(min(batch_tile, max(B, 1)), SUBLANE)
    Bp = _round_up(B, bt)

    x = jnp.stack([text_embeds, image_embeds], axis=0)          # (2, B, D) f32
    if (Bp, Dp) != (B, D):
        x = jnp.pad(x, ((0, 0), (0, Bp - B), (0, Dp - D)))      # only when needed

    grid = (2, Bp // bt)  # head axis OUTERMOST -> weights re-fetched once/head

    cdt_bytes = jnp.dtype(w1.dtype).itemsize
    weight_bytes = (Dp * Hp + Hp * Hp + Hp * Cp) * cdt_bytes + (2 * Hp + Cp) * 4
    io_bytes = bt * Dp * 4 + bt * Cp * 2          # f32 input tile + bf16 output tile
    act_bytes = 2 * bt * Hp * 4
    vmem_limit = int(2 * weight_bytes + 2 * io_bytes + act_bytes + (8 << 20))

    cost = pl.CostEstimate(
        flops=2 * 2 * Bp * (Dp * Hp + Hp * Hp + Hp * Cp),
        transcendentals=0,
        bytes_accessed=2 * (Bp * Dp * 4 + weight_bytes + Bp * Cp * 2),
    )

    out = pl.pallas_call(
        _fused_mlp_kernel,
        out_shape=jax.ShapeDtypeStruct((2, Bp, Cp), jnp.bfloat16),
        grid_spec=pltpu.PrefetchScalarGridSpec(
            num_scalar_prefetch=0,
            grid=grid,
            in_specs=[
                pl.BlockSpec((None, bt, Dp), lambda h, i: (h, i, 0)),  # x tile (f32)
                pl.BlockSpec((None, Dp, Hp), lambda h, i: (h, 0, 0)),  # w1 (resident)
                pl.BlockSpec((None, 1, Hp), lambda h, i: (h, 0, 0)),   # b1
                pl.BlockSpec((None, Hp, Hp), lambda h, i: (h, 0, 0)),  # w2
                pl.BlockSpec((None, 1, Hp), lambda h, i: (h, 0, 0)),   # b2
                pl.BlockSpec((None, Hp, Cp), lambda h, i: (h, 0, 0)),  # w3
                pl.BlockSpec((None, 1, Cp), lambda h, i: (h, 0, 0)),   # b3
            ],
            out_specs=pl.BlockSpec((None, bt, Cp), lambda h, i: (h, i, 0)),
        ),
        compiler_params=pltpu.CompilerParams(
            dimension_semantics=("parallel", "parallel"),
            vmem_limit_bytes=vmem_limit,
        ),
        cost_estimate=cost,
    )(x, w1, b1, w2, b2, w3, b3)

    logits = out[:, :B, :C].astype(jnp.float32)
    return logits[0], logits[1]


# ---------------------------------------------------------------------------
# FusionNet forward (logit-level fusion). The CLIP backbone is not translated;
# we consume its text/image embeddings directly. Cross-entropy loss is plain
# JAX — it is tiny relative to the MLP heads.
# ---------------------------------------------------------------------------
def cross_entropy_loss(logits, labels):
    logits = logits.astype(jnp.float32)
    lse = jax.nn.logsumexp(logits, axis=-1)
    true_logit = jnp.take_along_axis(logits, labels[:, None], axis=-1)[:, 0]
    return jnp.mean(lse - true_logit)


def fusion_net_forward(text_embeds, image_embeds, label, prepared, *, batch_tile=512):
    x1_logits, x2_logits = fused_mlp_forward(text_embeds, image_embeds, prepared,
                                             batch_tile=batch_tile)
    x1_loss = cross_entropy_loss(x1_logits, label)
    x2_loss = cross_entropy_loss(x2_logits, label)
    return x1_logits, x2_logits, x1_loss, x2_loss


# ---------------------------------------------------------------------------
# Parameter init (mirrors PyTorch nn.Linear uniform init) and references.
# ---------------------------------------------------------------------------
def init_mlp_params(key, input_dim, hidden_dim, num_classes):
    ks = jax.random.split(key, 6)
    s1 = 1.0 / jnp.sqrt(input_dim)
    s2 = 1.0 / jnp.sqrt(hidden_dim)
    w1 = jax.random.uniform(ks[0], (input_dim, hidden_dim), jnp.float32, -s1, s1)
    b1 = jax.random.uniform(ks[1], (1, hidden_dim), jnp.float32, -s1, s1)
    w2 = jax.random.uniform(ks[2], (hidden_dim, hidden_dim), jnp.float32, -s2, s2)
    b2 = jax.random.uniform(ks[3], (1, hidden_dim), jnp.float32, -s2, s2)
    w3 = jax.random.uniform(ks[4], (hidden_dim, num_classes), jnp.float32, -s2, s2)
    b3 = jax.random.uniform(ks[5], (1, num_classes), jnp.float32, -s2, s2)
    return (w1, b1, w2, b2, w3, b3)


def mlp_reference_f32(x, params):
    w1, b1, w2, b2, w3, b3 = params
    h1 = jnp.maximum(x @ w1 + b1, 0.0)
    h2 = jnp.maximum(h1 @ w2 + b2, 0.0)
    return h2 @ w3 + b3


def mlp_reference_bf16(x, params, compute_dtype=jnp.bfloat16):
    # Mirrors the kernel's numerics: bf16 operands, f32 accumulation, bf16 out.
    w1, b1, w2, b2, w3, b3 = params
    cdt = compute_dtype
    h1 = jnp.dot(x.astype(cdt), w1.astype(cdt), preferred_element_type=jnp.float32)
    h1 = jnp.maximum(h1 + b1, 0.0).astype(cdt)
    h2 = jnp.dot(h1, w2.astype(cdt), preferred_element_type=jnp.float32)
    h2 = jnp.maximum(h2 + b2, 0.0).astype(cdt)
    out = jnp.dot(h2, w3.astype(cdt), preferred_element_type=jnp.float32)
    return (out + b3).astype(cdt).astype(jnp.float32)


if __name__ == "__main__":
    # FusionNet heads: MLP(input_dim=512, hidden_dim=50, num_classes=2).
    # Small batch; the fused kernel runs both heads with one grid step each.
    batch, embed_dim, hidden_dim, num_classes = 64, 512, 50, 2

    key = jax.random.PRNGKey(0)
    k_txt, k_img, k_lbl, k_p1, k_p2 = jax.random.split(key, 5)
    text_embeds = jax.random.normal(k_txt, (batch, embed_dim), jnp.float32)
    image_embeds = jax.random.normal(k_img, (batch, embed_dim), jnp.float32)
    label = jax.random.randint(k_lbl, (batch,), 0, num_classes, dtype=jnp.int32)

    x1_params = init_mlp_params(k_p1, embed_dim, hidden_dim, num_classes)
    x2_params = init_mlp_params(k_p2, embed_dim, hidden_dim, num_classes)
    prepared = prepare_fusion_params(x1_params, x2_params, fusion_w1=1.0, fusion_w2=1.0)

    x1_logits, x2_logits, x1_loss, x2_loss = jax.block_until_ready(
        fusion_net_forward(text_embeds, image_embeds, label, prepared)
    )

    assert x1_logits.shape == (batch, num_classes)
    assert x2_logits.shape == (batch, num_classes)

    # Check vs a reference using the same bf16-operand / f32-accum / bf16-out path.
    ref1_bf16 = mlp_reference_bf16(text_embeds, x1_params)
    ref2_bf16 = mlp_reference_bf16(image_embeds, x2_params)
    assert jnp.allclose(x1_logits, ref1_bf16, atol=2e-2, rtol=2e-2)
    assert jnp.allclose(x2_logits, ref2_bf16, atol=2e-2, rtol=2e-2)

    # Loose check vs the original full-f32 math (bf16 rounding only).
    ref1_f32 = mlp_reference_f32(text_embeds, x1_params)
    ref2_f32 = mlp_reference_f32(image_embeds, x2_params)
    assert jnp.allclose(x1_logits, ref1_f32, atol=6e-2, rtol=6e-2)
    assert jnp.allclose(x2_logits, ref2_f32, atol=6e-2, rtol=6e-2)

    assert bool(jnp.isfinite(x1_loss)) and bool(jnp.isfinite(x2_loss))

    print("KERNEL_OK")
</pallas_src>

<mosaic_0001>
module attributes {stable_mosaic.version = 11 : i64} {
  func.func @_fused_mlp_kernel(%arg0: i32, %arg1: i32, %arg2: memref<1x64x512xf32, #tpu.memory_space<vmem>>, %arg3: memref<1x512x128xbf16, #tpu.memory_space<vmem>>, %arg4: memref<1x1x128xf32, #tpu.memory_space<vmem>>, %arg5: memref<1x128x128xbf16, #tpu.memory_space<vmem>>, %arg6: memref<1x1x128xf32, #tpu.memory_space<vmem>>, %arg7: memref<1x128x128xbf16, #tpu.memory_space<vmem>>, %arg8: memref<1x1x128xf32, #tpu.memory_space<vmem>>, %arg9: memref<1x64x128xbf16, #tpu.memory_space<vmem>>) attributes {dimension_semantics = [#tpu.dimension_semantics<parallel>, #tpu.dimension_semantics<parallel>], iteration_bounds = array<i64: 2, 1>, scalar_prefetch = 0 : i64, scratch_operands = 0 : i64, tpu.core_type = #tpu.core_type<tc>, window_params = [{transform_indices = @transform_0, window_bounds = array<i64: 1, 64, 512>}, {transform_indices = @transform_1, window_bounds = array<i64: 1, 512, 128>}, {transform_indices = @transform_2, window_bounds = array<i64: 1, 1, 128>}, {transform_indices = @transform_3, window_bounds = array<i64: 1, 128, 128>}, {transform_indices = @transform_4, window_bounds = array<i64: 1, 1, 128>}, {transform_indices = @transform_5, window_bounds = array<i64: 1, 128, 128>}, {transform_indices = @transform_6, window_bounds = array<i64: 1, 1, 128>}, {transform_indices = @transform_7, window_bounds = array<i64: 1, 64, 128>}]} {
    %c0 = arith.constant 0 : index
    %c0_0 = arith.constant 0 : index
    %c0_1 = arith.constant 0 : index
    %0 = vector.load %arg2[%c0, %c0_0, %c0_1] : memref<1x64x512xf32, #tpu.memory_space<vmem>>, vector<1x64x512xf32>
    %1 = vector.shape_cast %0 : vector<1x64x512xf32> to vector<64x512xf32>
    %2 = arith.truncf %1 : vector<64x512xf32> to vector<64x512xbf16>
    %c0_2 = arith.constant 0 : index
    %c0_3 = arith.constant 0 : index
    %c0_4 = arith.constant 0 : index
    %3 = vector.load %arg3[%c0_2, %c0_3, %c0_4] : memref<1x512x128xbf16, #tpu.memory_space<vmem>>, vector<1x512x128xbf16>
    %4 = vector.shape_cast %3 : vector<1x512x128xbf16> to vector<512x128xbf16>
    %cst = arith.constant dense<0.000000e+00> : vector<64x128xf32>
    %5 = tpu.matmul %2, %4, %cst {dimension_numbers = #tpu.dot_dimension_numbers<[1], [0], [0], [1], [0, 0, 1, 1], [], []>} : vector<64x512xbf16>, vector<512x128xbf16>, vector<64x128xf32> -> vector<64x128xf32>
    %c0_5 = arith.constant 0 : index
    %c0_6 = arith.constant 0 : index
    %c0_7 = arith.constant 0 : index
    %6 = vector.load %arg4[%c0_5, %c0_6, %c0_7] : memref<1x1x128xf32, #tpu.memory_space<vmem>>, vector<1x1x128xf32>
    %7 = vector.shape_cast %6 : vector<1x1x128xf32> to vector<1x128xf32>
    %8 = vector.broadcast %7 : vector<1x128xf32> to vector<64x128xf32>
    %9 = arith.addf %5, %8 : vector<64x128xf32>
    %cst_8 = arith.constant 0.000000e+00 : f32
    %10 = vector.broadcast %cst_8 : f32 to vector<64x128xf32>
    %11 = arith.maximumf %9, %10 : vector<64x128xf32>
    %12 = arith.truncf %11 : vector<64x128xf32> to vector<64x128xbf16>
    %c0_9 = arith.constant 0 : index
    %c0_10 = arith.constant 0 : index
    %c0_11 = arith.constant 0 : index
    %13 = vector.load %arg5[%c0_9, %c0_10, %c0_11] : memref<1x128x128xbf16, #tpu.memory_space<vmem>>, vector<1x128x128xbf16>
    %14 = vector.shape_cast %13 : vector<1x128x128xbf16> to vector<128x128xbf16>
    %cst_12 = arith.constant dense<0.000000e+00> : vector<64x128xf32>
    %15 = tpu.matmul %12, %14, %cst_12 {dimension_numbers = #tpu.dot_dimension_numbers<[1], [0], [0], [1], [0, 0, 1, 1], [], []>} : vector<64x128xbf16>, vector<128x128xbf16>, vector<64x128xf32> -> vector<64x128xf32>
    %c0_13 = arith.constant 0 : index
    %c0_14 = arith.constant 0 : index
    %c0_15 = arith.constant 0 : index
    %16 = vector.load %arg6[%c0_13, %c0_14, %c0_15] : memref<1x1x128xf32, #tpu.memory_space<vmem>>, vector<1x1x128xf32>
    %17 = vector.shape_cast %16 : vector<1x1x128xf32> to vector<1x128xf32>
    %18 = vector.broadcast %17 : vector<1x128xf32> to vector<64x128xf32>
    %19 = arith.addf %15, %18 : vector<64x128xf32>
    %cst_16 = arith.constant 0.000000e+00 : f32
    %20 = vector.broadcast %cst_16 : f32 to vector<64x128xf32>
    %21 = arith.maximumf %19, %20 : vector<64x128xf32>
    %22 = arith.truncf %21 : vector<64x128xf32> to vector<64x128xbf16>
    %c0_17 = arith.constant 0 : index
    %c0_18 = arith.constant 0 : index
    %c0_19 = arith.constant 0 : index
    %23 = vector.load %arg7[%c0_17, %c0_18, %c0_19] : memref<1x128x128xbf16, #tpu.memory_space<vmem>>, vector<1x128x128xbf16>
    %24 = vector.shape_cast %23 : vector<1x128x128xbf16> to vector<128x128xbf16>
    %cst_20 = arith.constant dense<0.000000e+00> : vector<64x128xf32>
    %25 = tpu.matmul %22, %24, %cst_20 {dimension_numbers = #tpu.dot_dimension_numbers<[1], [0], [0], [1], [0, 0, 1, 1], [], []>} : vector<64x128xbf16>, vector<128x128xbf16>, vector<64x128xf32> -> vector<64x128xf32>
    %c0_21 = arith.constant 0 : index
    %c0_22 = arith.constant 0 : index
    %c0_23 = arith.constant 0 : index
    %26 = vector.load %arg8[%c0_21, %c0_22, %c0_23] : memref<1x1x128xf32, #tpu.memory_space<vmem>>, vector<1x1x128xf32>
    %27 = vector.shape_cast %26 : vector<1x1x128xf32> to vector<1x128xf32>
    %28 = vector.broadcast %27 : vector<1x128xf32> to vector<64x128xf32>
    %29 = arith.addf %25, %28 : vector<64x128xf32>
    %30 = arith.truncf %29 : vector<64x128xf32> to vector<64x128xbf16>
    %c0_24 = arith.constant 0 : index
    %c0_25 = arith.constant 0 : index
    %c0_26 = arith.constant 0 : index
    %31 = vector.load %arg9[%c0_24, %c0_25, %c0_26] : memref<1x64x128xbf16, #tpu.memory_space<vmem>>, vector<1x64x128xbf16>
    %32 = vector.shape_cast %31 : vector<1x64x128xbf16> to vector<64x128xbf16>
    %33 = vector.shape_cast %30 : vector<64x128xbf16> to vector<1x64x128xbf16>
    tpu.vector_store %arg9[%c0_24, %c0_25, %c0_26], %33 {strides = array<i32>} : memref<1x64x128xbf16, #tpu.memory_space<vmem>>, vector<1x64x128xbf16>,
    return
  }
  func.func @transform_0(%arg0: i32, %arg1: i32) -> (i32, i32, i32) {
    %c0_i32 = arith.constant 0 : i32
    %c0_i32_0 = arith.constant 0 : i32
    return %arg0, %arg1, %c0_i32 : i32, i32, i32
  }
  func.func @transform_1(%arg0: i32, %arg1: i32) -> (i32, i32, i32) {
    %c0_i32 = arith.constant 0 : i32
    %c0_i32_0 = arith.constant 0 : i32
    %c0_i32_1 = arith.constant 0 : i32
    return %arg0, %c0_i32, %c0_i32_0 : i32, i32, i32
  }
  func.func @transform_2(%arg0: i32, %arg1: i32) -> (i32, i32, i32) {
    %c0_i32 = arith.constant 0 : i32
    %c0_i32_0 = arith.constant 0 : i32
    %c0_i32_1 = arith.constant 0 : i32
    return %arg0, %c0_i32, %c0_i32_0 : i32, i32, i32
  }
  func.func @transform_3(%arg0: i32, %arg1: i32) -> (i32, i32, i32) {
    %c0_i32 = arith.constant 0 : i32
    %c0_i32_0 = arith.constant 0 : i32
    %c0_i32_1 = arith.constant 0 : i32
    return %arg0, %c0_i32, %c0_i32_0 : i32, i32, i32
  }
  func.func @transform_4(%arg0: i32, %arg1: i32) -> (i32, i32, i32) {
    %c0_i32 = arith.constant 0 : i32
    %c0_i32_0 = arith.constant 0 : i32
    %c0_i32_1 = arith.constant 0 : i32
    return %arg0, %c0_i32, %c0_i32_0 : i32, i32, i32
  }
  func.func @transform_5(%arg0: i32, %arg1: i32) -> (i32, i32, i32) {
    %c0_i32 = arith.constant 0 : i32
    %c0_i32_0 = arith.constant 0 : i32
    %c0_i32_1 = arith.constant 0 : i32
    return %arg0, %c0_i32, %c0_i32_0 : i32, i32, i32
  }
  func.func @transform_6(%arg0: i32, %arg1: i32) -> (i32, i32, i32) {
    %c0_i32 = arith.constant 0 : i32
    %c0_i32_0 = arith.constant 0 : i32
    %c0_i32_1 = arith.constant 0 : i32
    return %arg0, %c0_i32, %c0_i32_0 : i32, i32, i32
  }
  func.func @transform_7(%arg0: i32, %arg1: i32) -> (i32, i32, i32) {
    %c0_i32 = arith.constant 0 : i32
    %c0_i32_0 = arith.constant 0 : i32
    return %arg0, %arg1, %c0_i32 : i32, i32, i32
  }
}

</mosaic_0001>

<bundles_post_ra>
// kernel: tpu_custom_call.1
= control target key start
LH: loop header
LB: loop body
LE: loop exit
PB: predicated region body
PF: predicated region fallthrough
CT: control target
= control target key end

     0   :  { %s2552_s0 = inlined_call_operand.hbm [shape: f32[2,64,512], index: 0, kind: input, shape index: {}]   ;;  %s2553_s1 = inlined_call_operand.hbm [shape: bf16[2,512,128], index: 1, kind: input, shape index: {}]   ;;  %s2554_s2 = inlined_call_operand.vmem [shape: f32[2,1,128], index: 2, kind: input, shape index: {}]   ;;  %s2555_s3 = inlined_call_operand.hbm [shape: bf16[2,128,128], index: 3, kind: input, shape index: {}]   ;;  %s2556_s4 = inlined_call_operand.vmem [shape: f32[2,1,128], index: 4, kind: input, shape index: {}]   ;;  %s2557_s5 = inlined_call_operand.hbm [shape: bf16[2,128,128], index: 5, kind: input, shape index: {}]   ;;  %s2558_s6 = inlined_call_operand.vmem [shape: f32[2,1,128], index: 6, kind: input, shape index: {}]   ;;  %s2559_s7 = inlined_call_operand.hbm [shape: bf16[2,64,128], index: 7, kind: output, shape index: {}]  }
   0x1   :  { %2573 = sst [smem:[#allocation20_spill]] %s2552_s0 }
   0x2   :  { %2574 = sst [smem:[#allocation21_spill]] %s2553_s1 }
   0x3   :  { %12 = vsyncpa [#allocation3], 0 }
   0x4   :  { %14 = vsyncpa [#allocation3 + $0x1], 0 }
   0x5   :  { %15 = vsyncpa [#allocation6], 0 }
   0x6   :  { %17 = vsyncpa [#allocation6 + $0x1], 0 }
   0x7   :  { %18 = vsyncpa [#allocation9], 0 }
   0x8   :  { %20 = vsyncpa [#allocation9 + $0x1], 0 }
   0x9   :  { %21 = vsyncpa [#allocation4], 0 }
   0xa   :  { %23 = vsyncpa [#allocation4 + $0x1], 0  ;;  %s2119_s24 = smov 0   ;;  %s2121_s25 = smov 0  }
   0xb   :  { %s2123_s26 = smov 0   ;;  %s2125_s27 = smov 0  }
   0xc   :  { %s2127_s28 = smov 0   ;;  %s2129_s29 = smov 0  }
   0xd LB: > { %2575 = sst [smem:[#allocation15_spill]] %s2054_s26  ;;  %s2150_s30 = sadd.s32 4294967295, %s2066_s29   ;;  %s2066_s29 = sphi %s2129_s29, %s29_s29   ;;  %s2062_s28 = sphi %s2127_s28, %s2606_s28   ;;  %s2058_s27 = sphi %s2125_s27, %s2605_s27   ;;  %s2054_s26 = sphi %s2123_s26, %s2601_s26   ;;  %s2050_s25 = sphi %s2121_s25, %s2604_s25   ;;  %s2046_s24 = sphi %s2119_s24, %s2603_s24  }
   0xe   : > { %2576 = sst [smem:[#allocation16_spill]] %s2066_s29  ;;  %s1452_s8 = sadd.s32 4294967294, %s2066_s29  }
   0xf   : > { %s41_s9 = sadd.s32 1, %s2062_s28  ;;  %s50_s10 = sadd.s32 1, %s2054_s26 }
  0x10   : > { %p43_p0 = scmp.ge.s32.totalorder %s41_s9, 2  ;;  %p57_p1 = scmp.ne.s32.totalorder %s2054_s26, %s2050_s25 }
  0x11   : > { %p58_p2 = scmp.eq.s32.totalorder %s2066_s29, 0  ;;  %p63_p3 = scmp.ne.s32.totalorder %s2050_s25, %s2046_s24 }
  0x12   : > { %s2608_s9 = smov (%p43_p0, %s41_s9), 0  ;;  %p64_p5 = scmp.eq.s32.totalorder %s2150_s30, 0 }
  0x13   : > { %2577 = sst [smem:[#allocation17_spill]] %s2608_s9  ;;  %p2162_p4 = por %p58_p2, %p57_p1 }
  0x14   : > { %s45_s12 = ssub.s32 %s2062_s28, %s2608_s9  ;;  %p245_p6 = scmp.eq.s32.totalorder %s2150_s30, 1 }
  0x15   : > { %p48_p7 = scmp.eq.s32.totalorder %s45_s12, 0  ;;  %p2170_p8 = por %p64_p5, %p63_p3 }
  0x16   : > { %p2174_p9 = por %p245_p6, %p57_p1  ;;  %p251_p10 = scmp.eq.s32.totalorder %s1452_s8, 1 }
  0x17   : > { %s2579_s13 = scalar_select %p2170_p8, 1, 0 }
  0x18   : > { %s2580_s14 = scalar_select %p2174_p9, 1, 0 }
  0x19   : > { %s2179_s15 = scalar_select %p48_p7, %s2054_s26, %s50_s10  }
  0x1a   : > { %p2181_p11 = por %p251_p10, %p63_p3  ;;  %p1752_p13 = scmp.lt.s32.totalorder %s2066_s29, 2 }
  0x1b   : > { %2581 = sst [smem:[#allocation18_spill]] %s2179_s15  ;;  %s2188_s17 = sand.u32 1, %s2054_s26  }
  0x1c   : > { %s2582_s16 = scalar_select %p2181_p11, 1, 0 }
  0x1d   : > { %s2561_s18 = sshll.u32 %s2188_s17, 8  ;;  %s2562_s19 = sshll.u32 %s2062_s28, 12 }
  0x1e   : > { %2583 = sst [smem:[#allocation19_spill]] %s2582_s16  ;;  %p2194_p0 = pnand %p1752_p13, %p2162_p4 }
  0x1f   : > { %s295_s21 = sand.u32 1, %s2066_s29   ;;  %s2585_s1 = sld [smem:[#allocation21_spill]] }
  0x20   : > { %s299_s10 = scalar_lea.vmem [#allocation5], %s2561_s18  ;;  %s2210_s11 = scalar_lea.sflag [#allocation6], %s295_s21 }
  0x21   : > { %s306_s12 = sshll.u32 %s299_s10, 4  ;;  %p2216_p2 = pneg %p2194_p0  ;;  %s2208_s12 = int_to_ptr.vmem [resolvable:$true] %s306_s12 }
  0x25   : > { %s2204_s8 = scalar_lea.hbm %s2585_s1, %s2562_s19  ;;  %s1861_s18 = scalar_lea.hbm %s2585_s1, 8192 }
  0x26   : > { %s1856_s9 = scalar_lea.hbm %s2204_s8, 4096  ;;  %p1862_p5 = scmp.lt.u32.totalorder %s2204_s8, %s2585_s1 }
  0x27   : > { %p1857_p1 = scmp.ne.s32.totalorder %s2204_s8, %s1856_s9  ;;  %p1863_p6 = scmp.lt.u32.totalorder %s1861_s18, %s1856_s9 }
  0x28   : > { %p1865_p10 = scmp.lt.u32.totalorder %s1856_s9, %s2204_s8 }
  0x29   : > { %p1859_p3 = pnand %p2216_p2, %p1857_p1  ;;  %p1864_p7 = por %p1863_p6, %p1862_p5 }
  0x2b   : > { %p1860_p4 = pneg %p1859_p3  ;;  %p1866_p13 = por %p1865_p10, %p1864_p7 }
  0x2d   : > { %p1867_p12 = pnand %p1866_p13, %p1860_p4 }
  0x2f   : > { %1870 = shalt.err (!%p1867_p12)
}
  0x30   : > { %s1871_s21 = scalar_lea.vmem %s2208_s12, 4096  ;;  %s2068_s22 = smov [#allocation5]  }
  0x31   : > { %p1872_p1 = scmp.ne.s32.totalorder %s2208_s12, %s1871_s21  ;;  %s1876_s23 = sshll.u32 %s2068_s22, 4  ;;  %s1877_s23 = int_to_ptr.vmem [resolvable:$false] %s1876_s23 }
  0x32   : > { %s1878_s19 = scalar_lea.vmem %s1877_s23, 8192  ;;  %p1879_p9 = scmp.lt.s32.totalorder %s2208_s12, %s1877_s23 }
  0x33   : > { %p1874_p3 = pnand %p1872_p1, %p2216_p2  ;;  %p1880_p8 = scmp.lt.s32.totalorder %s1878_s19, %s1871_s21 }
  0x35   : > { %p1875_p11 = pneg %p1874_p3  ;;  %p1881_p5 = por %p1880_p8, %p1879_p9 }
  0x37   : > { %p1882_p6 = pnand %p1881_p5, %p1875_p11 }
  0x39   : > { %1885 = shalt.err (!%p1882_p6)
}
  0x3a   : > { %s2567_s9 = smov 64   ;;  %s2569_s18 = smov 4  }
  0x3b   : > { %1741 = dma.hbm_to_vmem [thread:$0]  (!%p2194_p0), %s2204_s8, 4096, %s2208_s12, %s2210_s11, %s2567_s9, %s2567_s9, %s2569_s18  }
  0x3c   : > { %p1467_p8 = scmp.ge.s32.totalorder %s2066_s29, 1  ;;  %p374_p9 = scmp.lt.s32.totalorder %s2066_s29, 3 }
  0x3d   : > { %s2588_s21 = sshll.u32 %s2062_s28, 12  ;;  %s2589_s0 = sld [smem:[#allocation20_spill]] }
  0x3e   : > { %p2245_p11 = pnand %p1467_p8, %p374_p9  ;;  %s2590_s1 = sshll.u32 %s2188_s17, 8 }
  0x3f   : > { %s275_s26 = scalar_lea.vmem [#allocation2], %s2590_s1  ;;  %s272_s8 = scalar_lea.sflag [#allocation3], %s2188_s17 }
  0x40   : > { %s2587_s10 = scalar_select %p2245_p11, 1, 0 }
  0x41   : > { %s285_s16 = sshll.u32 %s275_s26, 4  ;;  %s2258_s16 = int_to_ptr.vmem [resolvable:$true] %s285_s16 }
  0x43   : > { %s2254_s19 = scalar_lea.hbm %s2589_s0, %s2588_s21  ;;  %s1891_s21 = scalar_lea.hbm %s2589_s0, 8192 }
  0x44   : > { %s1886_s12 = scalar_lea.hbm %s2254_s19, 4096  ;;  %p1892_p10 = scmp.lt.u32.totalorder %s2254_s19, %s2589_s0 }
  0x45   : > { %p1887_p12 = scmp.ne.s32.totalorder %s2254_s19, %s1886_s12  ;;  %p1893_p13 = scmp.lt.u32.totalorder %s1891_s21, %s1886_s12 }
  0x46   : > { %p1895_p3 = scmp.lt.u32.totalorder %s1886_s12, %s2254_s19 }
  0x47   : > { %p1889_p4 = pnand %p1887_p12, %p2216_p2  ;;  %p1894_p1 = por %p1893_p13, %p1892_p10 }
  0x49   : > { %p1890_p7 = pneg %p1889_p4  ;;  %p1896_p5 = por %p1895_p3, %p1894_p1 }
  0x4b   : > { %p1897_p6 = pnand %p1896_p5, %p1890_p7 }
  0x4d   : > { %1900 = shalt.err (!%p1897_p6)
}
  0x4e   : > { %s1901_s1 = scalar_lea.vmem %s2258_s16, 4096  ;;  %s2071_s26 = smov [#allocation2]  }
  0x4f   : > { %p1902_p8 = scmp.ne.s32.totalorder %s2258_s16, %s1901_s1  ;;  %s1906_s9 = sshll.u32 %s2071_s26, 4  ;;  %s1907_s9 = int_to_ptr.vmem [resolvable:$false] %s1906_s9 }
  0x50   : > { %s1908_s18 = scalar_lea.vmem %s1907_s9, 8192  ;;  %p1909_p4 = scmp.lt.s32.totalorder %s2258_s16, %s1907_s9 }
  0x51   : > { %p1904_p9 = pnand %p1902_p8, %p2216_p2  ;;  %p1910_p11 = scmp.lt.s32.totalorder %s1908_s18, %s1901_s1 }
  0x53   : > { %p1905_p12 = pneg %p1904_p9  ;;  %p1911_p10 = por %p1910_p11, %p1909_p4 }
  0x55   : > { %p1912_p13 = pnand %p1911_p10, %p1905_p12 }
  0x57   : > { %1915 = shalt.err (!%p1912_p13)
}
  0x58   : > { %s2072_s12 = smov 512   ;;  %s2073_s21 = smov 32  }
  0x59   : > { %1738 = dma.hbm_to_vmem [thread:$0]  (!%p2194_p0), %s2254_s19, 4096, %s2258_s16, %s272_s8, %s2072_s12, %s2072_s12, %s2073_s21  }
  0x5a   : > { %s1461_s22 = sshll.u32 %s2188_s17, 6  ;;  %s1539_s23 = sshll.u32 %s2062_s28, 10 }
  0x5b   : > { %s2291_s9 = scalar_lea.hbm %s2555_s3, %s1539_s23  ;;  %s326_s18 = scalar_lea.vmem [#allocation7], %s1461_s22 }
  0x5c   : > { %s333_s0 = sshll.u32 %s326_s18, 4  ;;  %s1916_s29 = scalar_lea.hbm %s2291_s9, 1024  ;;  %s2295_s0 = int_to_ptr.vmem [resolvable:$true] %s333_s0 }
  0x5d   : > { %p1917_p11 = scmp.ne.s32.totalorder %s2291_s9, %s1916_s29  ;;  %s1921_s8 = scalar_lea.hbm %s2555_s3, 2048 }
  0x5e   : > { %p1922_p3 = scmp.lt.u32.totalorder %s2291_s9, %s2555_s3  ;;  %p1923_p5 = scmp.lt.u32.totalorder %s1921_s8, %s1916_s29 }
  0x5f   : > { %p1919_p7 = pnand %p1917_p11, %p2216_p2  ;;  %p1925_p8 = scmp.lt.u32.totalorder %s1916_s29, %s2291_s9 }
  0x60   : > { %p1924_p6 = por %p1923_p5, %p1922_p3 }
  0x61   : > { %p1920_p1 = pneg %p1919_p7 }
  0x62   : > { %p1926_p9 = por %p1925_p8, %p1924_p6 }
  0x64   : > { %p1927_p12 = pnand %p1926_p9, %p1920_p1 }
  0x66   : > { %1930 = shalt.err (!%p1927_p12)
}
  0x67   : > { %s1931_s1 = scalar_lea.vmem %s2295_s0, 1024  ;;  %s2074_s26 = smov [#allocation7]  }
  0x68   : > { %p1932_p4 = scmp.ne.s32.totalorder %s2295_s0, %s1931_s1  ;;  %s1936_s18 = sshll.u32 %s2074_s26, 4  ;;  %s1937_s18 = int_to_ptr.vmem [resolvable:$false] %s1936_s18 }
  0x69   : > { %s1938_s16 = scalar_lea.vmem %s1937_s18, 2048  ;;  %p1939_p11 = scmp.lt.s32.totalorder %s2295_s0, %s1937_s18 }
  0x6a   : > { %p1934_p10 = pnand %p1932_p4, %p2216_p2  ;;  %p1940_p7 = scmp.lt.s32.totalorder %s1938_s16, %s1931_s1 }
  0x6c   : > { %p1935_p13 = pneg %p1934_p10  ;;  %p1941_p3 = por %p1940_p7, %p1939_p11 }
  0x6e   : > { %p1942_p5 = pnand %p1941_p3, %p1935_p13 }
  0x70   : > { %1945 = shalt.err (!%p1942_p5)
}
  0x71   : > { %s2591_s29 = smov 4   ;;  %s2592_s19 = smov 64  }
  0x72   : > { %1744 = dma.hbm_to_vmem [thread:$0]  (!%p2194_p0), %s2291_s9, 1024, %s2295_s0, %s2210_s11, %s2592_s19, %s2592_s19, %s2591_s29  }
  0x73   : > { %s2327_s21 = scalar_lea.hbm %s2557_s5, %s1539_s23  ;;  %s353_s1 = scalar_lea.vmem [#allocation8], %s1461_s22 }
  0x74   : > { %s360_s26 = sshll.u32 %s353_s1, 4  ;;  %s350_s18 = scalar_lea.sflag [#allocation9], %s2188_s17  ;;  %s2331_s26 = int_to_ptr.vmem [resolvable:$true] %s360_s26 }
  0x75   : > { %s1946_s16 = scalar_lea.hbm %s2327_s21, 1024  ;;  %s1951_s23 = scalar_lea.hbm %s2557_s5, 2048 }
  0x76   : > { %p1947_p1 = scmp.ne.s32.totalorder %s2327_s21, %s1946_s16  ;;  %p1952_p9 = scmp.lt.u32.totalorder %s2327_s21, %s2557_s5 }
  0x77   : > { %p1953_p12 = scmp.lt.u32.totalorder %s1951_s23, %s1946_s16  ;;  %p1955_p10 = scmp.lt.u32.totalorder %s1946_s16, %s2327_s21 }
  0x78   : > { %p1949_p6 = pnand %p1947_p1, %p2216_p2 }
  0x79   : > { %p1954_p4 = por %p1953_p12, %p1952_p9 }
  0x7a   : > { %p1950_p8 = pneg %p1949_p6 }
  0x7b   : > { %p1956_p13 = por %p1955_p10, %p1954_p4 }
  0x7d   : > { %p1957_p11 = pnand %p1956_p13, %p1950_p8 }
  0x7f   : > { %1960 = shalt.err (!%p1957_p11)
}
  0x80   : > { %s1961_s22 = scalar_lea.vmem %s2331_s26, 1024  ;;  %s2075_s12 = smov [#allocation8]  }
  0x81   : > { %p1962_p7 = scmp.ne.s32.totalorder %s2331_s26, %s1961_s22  ;;  %s1966_s1 = sshll.u32 %s2075_s12, 4  ;;  %s1967_s1 = int_to_ptr.vmem [resolvable:$false] %s1966_s1 }
  0x82   : > { %s1968_s0 = scalar_lea.vmem %s1967_s1, 2048  ;;  %p1969_p1 = scmp.lt.s32.totalorder %s2331_s26, %s1967_s1 }
  0x83   : > { %p1964_p3 = pnand %p1962_p7, %p2216_p2  ;;  %p1970_p6 = scmp.lt.s32.totalorder %s1968_s0, %s1961_s22 }
  0x85   : > { %p1965_p5 = pneg %p1964_p3  ;;  %p1971_p9 = por %p1970_p6, %p1969_p1 }
  0x87   : > { %p1972_p12 = pnand %p1971_p9, %p1965_p5 }
  0x89   : > { %1975 = shalt.err (!%p1972_p12)
}
  0x8a   : > { %1747 = dma.hbm_to_vmem [thread:$0]  (!%p2194_p0), %s2327_s21, 1024, %s2331_s26, %s350_s18, %s2592_s19, %s2592_s19, %s2591_s29  }
  0x8b   : > { %p2593_p2 = scmp.ne.s32.totalorder %s2587_s10, 0 }
  0x8c   : > { %s2363_s15 = sand.u32 (!%p2593_p2), 1, %s2050_s25   ;;  %p2594_p8 = scmp.ne.s32.totalorder (!%p2593_p2), %s2579_s13, 0 }
  0x8d   : > { %378 = sbr.rel (%p2593_p2) target bundleno = 894 (0x37e), region = 48  ;;  %s1468_s16 = sshll.u32 (!%p2593_p2), %s2363_s15, 8 }
  0x8e   : > { %s381_s11 = scalar_lea.sflag (!%p2593_p2), [#allocation3], %s2363_s15  ;;  %s2367_s20 = scalar_lea.vmem (!%p2593_p2), [#allocation2], %s1468_s16 }
  0x94   : > { %2029 = dma.done.wait (%p2594_p8), %s381_s11, 4096  }
  0x95   : > { %2031 = vsyncadd (%p2594_p8), %s381_s11, 4294963200  ;;  %s389_s17 = sand.u32 1, %s2150_s30   ;;  %s2374_s29 = scalar_lea.vmem [#allocation5], %s1468_s16 }
  0x96   : > { %s390_s10 = scalar_lea.sflag [#allocation6], %s389_s17 }
  0x97   : > { %2033 = dma.done.wait (%p2594_p8), %s390_s10, 5120  }
  0x98   : > { %2035 = vsyncadd (%p2594_p8), %s390_s10, 4294962176  ;;  %s1470_s19 = sshll.u32 %s2363_s15, 6  ;;  %s408_s26 = scalar_lea.sflag [#allocation9], %s2363_s15 }
  0x99   : > { %s2381_s21 = scalar_lea.vmem [#allocation7], %s1470_s19  ;;  %s2384_s18 = scalar_lea.vmem [#allocation8], %s1470_s19 }
  0x9a   : > { %2037 = dma.done.wait (%p2594_p8), %s408_s26, 1024  }
  0x9b   : > { %2039 = vsyncadd (%p2594_p8), %s408_s26, 4294966272  ;;  %v1808_v0 = vld [vmem:[%s2374_s29 + $0x40] sm:$0xff]   ;;  %v1812_v4 = vld [vmem:[%s2374_s29 + $0x48] sm:$0xff]   ;;  %p467_p0 = scmp.lt.s32.totalorder %s2058_s27, 1  ;;  %s1472_s11 = sshll.u32 %s2363_s15, 5 }
  0x9c   : > { %v1809_v1 = vld [vmem:[%s2374_s29 + $0xc0] sm:$0xff]   ;;  %1573 = vmatprep.subr.bf16.mxu0 %v1808_v0  ;;  %v1813_v5 = vld [vmem:[%s2374_s29 + $0xc8] sm:$0xff]   ;;  %v1816_v8 = vld [vmem:[%s2374_s29 + $0x50] sm:$0xff]   ;;  %s1549_s10 = sshll.u32 %s2058_s27, 9  ;;  %p2595_p10 = scmp.ne.s32.totalorder %s2580_s14, 0 }
  0x9d   : > { %v1810_v2 = vld [vmem:[%s2374_s29] sm:$0xff]   ;;  %1613 = vmatprep.subr.bf16.mxu1 %v1809_v1  ;;  %v1814_v6 = vld [vmem:[%s2374_s29 + $0x8] sm:$0xff]   ;;  %v1817_v9 = vld [vmem:[%s2374_s29 + $0xd0] sm:$0xff]   ;;  %s2470_s30 = scalar_select %p467_p0, %s2058_s27, 1 }
  0x9e   : > { %v1811_v3 = vld [vmem:[%s2374_s29 + $0x80] sm:$0xff]   ;;  %1574 = vmatpush3.bf16.msra.mxu0 %v1810_v2  ;;  %v1815_v7 = vld [vmem:[%s2374_s29 + $0x88] sm:$0xff]   ;;  %v1818_v10 = vld [vmem:[%s2374_s29 + $0x10] sm:$0xff]   ;;  %s1256_s27 = scalar_lea.sflag [#allocation4], %s2363_s15 }
  0x9f   : > { %1614 = vmatpush3.bf16.msra.mxu1 %v1811_v3  ;;  %1575 = vmatprep.subr.bf16.mxu0 %v1812_v4  ;;  %v1819_v11 = vld [vmem:[%s2374_s29 + $0x90] sm:$0xff]   ;;  %v1820_v12 = vld [vmem:[%s2374_s29 + $0x58] sm:$0xff]   ;;  %v1824_v16 = vld [vmem:[%s2374_s29 + $0x60] sm:$0xff]   ;;  %s469_s9 = scalar_lea.vmem %s2554_s2, %s2470_s30  ;;  %s472_s12 = scalar_lea.vmem %s2556_s4, %s2470_s30 }
  0xa0   : > { %1615 = vmatprep.subr.bf16.mxu1 %v1813_v5  ;;  %v1821_v13 = vld [vmem:[%s2374_s29 + $0xd8] sm:$0xff]   ;;  %v1825_v17 = vld [vmem:[%s2374_s29 + $0xe0] sm:$0xff]   ;;  %v1828_v20 = vld [vmem:[%s2374_s29 + $0x68] sm:$0xff]   ;;  %s475_s16 = scalar_lea.vmem %s2558_s6, %s2470_s30 }
  0xa1   : > { %v1822_v14 = vld [vmem:[%s2374_s29 + $0x18] sm:$0xff]   ;;  %v1826_v18 = vld [vmem:[%s2374_s29 + $0x20] sm:$0xff]   ;;  %v1829_v21 = vld [vmem:[%s2374_s29 + $0xe8] sm:$0xff]  }
  0xa2   : > { %1576 = vmatpush3.bf16.msra.mxu0 %v1814_v6  ;;  %v1823_v15 = vld [vmem:[%s2374_s29 + $0x98] sm:$0xff]   ;;  %v1827_v19 = vld [vmem:[%s2374_s29 + $0xa0] sm:$0xff]   ;;  %v1830_v22 = vld [vmem:[%s2374_s29 + $0x28] sm:$0xff]  }
  0xa3   : > { %1616 = vmatpush3.bf16.msra.mxu1 %v1815_v7  ;;  %1577 = vmatprep.subr.bf16.mxu0 %v1816_v8  ;;  %v1831_v23 = vld [vmem:[%s2374_s29 + $0xa8] sm:$0xff]   ;;  %v1832_v24 = vld [vmem:[%s2374_s29 + $0x70] sm:$0xff]   ;;  %v1836_v28 = vld [vmem:[%s2374_s29 + $0x78] sm:$0xff]  }
  0xa4   : > { %1617 = vmatprep.subr.bf16.mxu1 %v1817_v9  ;;  %v1833_v25 = vld [vmem:[%s2374_s29 + $0xf0] sm:$0xff]   ;;  %v1837_v29 = vld [vmem:[%s2374_s29 + $0xf8] sm:$0xff]   ;;  %v479_v32 = vld [vmem:[%s2367_s20 + $0x8] sm:$0xff] }
  0xa5   : > { %v1834_v26 = vld [vmem:[%s2374_s29 + $0x30] sm:$0xff]   ;;  %v1838_v30 = vld [vmem:[%s2374_s29 + $0x38] sm:$0xff]   ;;  %v483_v33 = vld [vmem:[%s2367_s20 + $0x28] sm:$0xff] }
  0xa6   : > { %1578 = vmatpush3.bf16.msra.mxu0 %v1818_v10  ;;  %v1835_v27 = vld [vmem:[%s2374_s29 + $0xb0] sm:$0xff]   ;;  %v1839_v31 = vld [vmem:[%s2374_s29 + $0xb8] sm:$0xff]   ;;  %v511_v35 = vpack.c.bf16 %v483_v33, %v479_v32  ;;  %v478_v37 = vld [vmem:[%s2367_s20] sm:$0xff] }
  0xa7   : > { %1618 = vmatpush3.bf16.msra.mxu1 %v1819_v11  ;;  %1579 = vmatprep.subr.bf16.mxu0 %v1820_v12  ;;  %v481_v34 = vld [vmem:[%s2367_s20 + $0x18] sm:$0xff]  ;;  %v482_v38 = vld [vmem:[%s2367_s20 + $0x20] sm:$0xff]  ;;  %v480_v41 = vld [vmem:[%s2367_s20 + $0x10] sm:$0xff] }
  0xa8   : > { %1619 = vmatprep.subr.bf16.mxu1 %v1821_v13  ;;  %v485_v36 = vld [vmem:[%s2367_s20 + $0x38] sm:$0xff]  ;;  %v510_v40 = vpack.c.bf16 %v482_v38, %v478_v37  ;;  %v484_v42 = vld [vmem:[%s2367_s20 + $0x30] sm:$0xff]  ;;  %v487_v43 = vld [vmem:[%s2367_s20 + $0x48] sm:$0xff]  ;;  %821 = vmatprep.mubr.bf16.mxu0 %v511_v35 }
  0xa9   : > { %v513_v39 = vpack.c.bf16 %v485_v36, %v481_v34  ;;  %v512_v44 = vpack.c.bf16 %v484_v42, %v480_v41  ;;  %v491_v45 = vld [vmem:[%s2367_s20 + $0x68] sm:$0xff]  ;;  %v489_v46 = vld [vmem:[%s2367_s20 + $0x58] sm:$0xff]  ;;  %v486_v50 = vld [vmem:[%s2367_s20 + $0x40] sm:$0xff] }
  0xaa   : > { %1580 = vmatpush3.bf16.msra.mxu0 %v1822_v14  ;;  %v493_v47 = vld [vmem:[%s2367_s20 + $0x78] sm:$0xff]  ;;  %v515_v48 = vpack.c.bf16 %v491_v45, %v487_v43  ;;  %v490_v51 = vld [vmem:[%s2367_s20 + $0x60] sm:$0xff]  ;;  %v488_v52 = vld [vmem:[%s2367_s20 + $0x50] sm:$0xff] }
  0xab   : > { %1620 = vmatpush3.bf16.msra.mxu1 %v1823_v15  ;;  %1581 = vmatprep.subr.bf16.mxu0 %v1824_v16  ;;  %v517_v49 = vpack.c.bf16 %v493_v47, %v489_v46  ;;  %v492_v53 = vld [vmem:[%s2367_s20 + $0x70] sm:$0xff]  ;;  %v495_v54 = vld [vmem:[%s2367_s20 + $0x88] sm:$0xff]  ;;  %v497_v56 = vld [vmem:[%s2367_s20 + $0x98] sm:$0xff]  ;;  %v514_v58 = vpack.c.bf16 %v490_v51, %v486_v50 }
  0xac   : > { %1621 = vmatprep.subr.bf16.mxu1 %v1825_v17  ;;  %886 = vmatprep.mubr.bf16.mxu1 %v513_v39  ;;  %v499_v55 = vld [vmem:[%s2367_s20 + $0xa8] sm:$0xff]  ;;  %v501_v57 = vld [vmem:[%s2367_s20 + $0xb8] sm:$0xff]  ;;  %v516_v59 = vpack.c.bf16 %v492_v53, %v488_v52  ;;  %v494_v62 = vld [vmem:[%s2367_s20 + $0x80] sm:$0xff] }
  0xad   : > { %v519_v60 = vpack.c.bf16 %v499_v55, %v495_v54  ;;  %v521_v61 = vpack.c.bf16 %v501_v57, %v497_v56  ;;  %v498_v63 = vld [vmem:[%s2367_s20 + $0xa0] sm:$0xff]  ;;  %v496_v1 = vld [vmem:[%s2367_s20 + $0x90] sm:$0xff]  ;;  %v503_v3 = vld [vmem:[%s2367_s20 + $0xc8] sm:$0xff] }
  0xae   : > { %1582 = vmatpush3.bf16.msra.mxu0 %v1826_v18  ;;  %v1840_v0 = vld [vmem:[%s2381_s21] sm:$0xff]   ;;  %v500_v2 = vld [vmem:[%s2367_s20 + $0xb0] sm:$0xff]  ;;  %v507_v4 = vld [vmem:[%s2367_s20 + $0xe8] sm:$0xff]  ;;  %v518_v9 = vpack.c.bf16 %v498_v63, %v494_v62 }
  0xaf   : > { %1622 = vmatpush3.bf16.msra.mxu1 %v1827_v19  ;;  %1583 = vmatprep.subr.bf16.mxu0 %v1828_v20  ;;  %v1841_v5 = vld [vmem:[%s2381_s21 + $0x8] sm:$0xff]   ;;  %v505_v6 = vld [vmem:[%s2367_s20 + $0xd8] sm:$0xff]  ;;  %v1842_v8 = vld [vmem:[%s2381_s21 + $0x10] sm:$0xff]   ;;  %v520_v10 = vpack.c.bf16 %v500_v2, %v496_v1  ;;  %v523_v11 = vpack.c.bf16 %v507_v4, %v503_v3 }
  0xb0   : > { %1623 = vmatprep.subr.bf16.mxu1 %v1829_v21  ;;  %v509_v7 = vld [vmem:[%s2367_s20 + $0xf8] sm:$0xff]  ;;  %v502_v13 = vld [vmem:[%s2367_s20 + $0xc0] sm:$0xff]  ;;  %v504_v15 = vld [vmem:[%s2367_s20 + $0xd0] sm:$0xff] }
  0xb1   : > { %v525_v12 = vpack.c.bf16 %v509_v7, %v505_v6  ;;  %v506_v14 = vld [vmem:[%s2367_s20 + $0xe0] sm:$0xff]  ;;  %v508_v16 = vld [vmem:[%s2367_s20 + $0xf0] sm:$0xff]  ;;  %v1843_v19 = vld [vmem:[%s2381_s21 + $0x18] sm:$0xff]   ;;  %s465_s20 = scalar_lea.vmem [#allocation10], %s1472_s11 }
  0xb2   : > { %1584 = vmatpush3.bf16.msra.mxu0 %v1830_v22  ;;  %v522_v17 = vpack.c.bf16 %v506_v14, %v502_v13  ;;  %v524_v18 = vpack.c.bf16 %v508_v16, %v504_v15  ;;  %v1844_v20 = vld [vmem:[%s2381_s21 + $0x20] sm:$0xff]   ;;  %v1845_v21 = vld [vmem:[%s2381_s21 + $0x28] sm:$0xff]   ;;  %v1846_v22 = vld [vmem:[%s2381_s21 + $0x30] sm:$0xff]   ;;  %s1271_s17 = sshll.u32 %s465_s20, 4  ;;  %s2498_s17 = int_to_ptr.vmem [resolvable:$true] %s1271_s17 }
  0xb3   : > { %1624 = vmatpush3.bf16.msra.mxu1 %v1831_v23  ;;  %1585 = vmatprep.subr.bf16.mxu0 %v1832_v24  ;;  %v1847_v23 = vld [vmem:[%s2381_s21 + $0x38] sm:$0xff]   ;;  %v1848_v24 = vld [vmem:[%s2384_s18] sm:$0xff]   ;;  %s2503_s21 = scalar_lea.hbm %s2559_s7, %s1549_s10  ;;  %s1976_s26 = scalar_lea.vmem %s2498_s17, 512 }
  0xb4   : > { %1625 = vmatprep.subr.bf16.mxu1 %v1833_v25  ;;  %v1849_v25 = vld [vmem:[%s2384_s18 + $0x8] sm:$0xff]   ;;  %v2476_v32 = vld [vmem:[%s469_s9] ss:$0 sm:$0xff]  ;;  %p1977_p4 = scmp.ne.s32.totalorder %s2498_s17, %s1976_s26 }
  0xb6   : > { %1586 = vmatpush3.bf16.msra.mxu0 %v1834_v26  ;;  %v1850_v26 = vld [vmem:[%s2384_s18 + $0x10] sm:$0xff]   ;;  %p1978_p13 = pnand %p1977_p4, %p2595_p10 }
  0xb7   : > { %1626 = vmatpush3.bf16.msra.mxu1 %v1835_v27  ;;  %1587 = vmatprep.subr.bf16.mxu0 %v1836_v28  ;;  %v1851_v27 = vld [vmem:[%s2384_s18 + $0x18] sm:$0xff]   ;;  %v1852_v28 = vld [vmem:[%s2384_s18 + $0x20] sm:$0xff]  }
  0xb8   : > { %1627 = vmatprep.subr.bf16.mxu1 %v1837_v29  ;;  %v1853_v29 = vld [vmem:[%s2384_s18 + $0x28] sm:$0xff]   ;;  %p1979_p11 = pneg %p1978_p13 }
  0xba   : > { %1588 = vmatpush3.bf16.msra.mxu0 %v1838_v30 }
  0xbb   : > { %1628 = vmatpush3.bf16.msra.mxu1 %v1839_v31  ;;  %1677 = vmatprep.subr.bf16.mxu0 %v1840_v0 }
  0xbc   : > { %1701 = vmatprep.subr.bf16.mxu1 %v1848_v24 }
  0xbd   : > { %822 = vmatmul.mubr.bf16.vlgmr.msra.gmra.mrb[0].mxu0 %v510_v40 }
  0xbe   : > { %887 = vmatmul.mubr.bf16.vlgmr.msra.gmra.mrb[0].mxu1 %v512_v44  ;;  %829 = vmatprep.mubr.bf16.mxu0 %v515_v48 }
  0xbf   : > { %894 = vmatprep.mubr.bf16.mxu1 %v517_v49  ;;  %1678 = vmatpush3.bf16.msra.mxu0 %v1840_v0 }
  0xc0   : > { %1679 = vmatprep.subr.bf16.mxu0 %v1841_v5  ;;  %1702 = vmatpush3.bf16.msra.mxu1 %v1848_v24 }
  0xc1   : > { %1703 = vmatprep.subr.bf16.mxu1 %v1849_v25 }
  0xc3   : > { %1680 = vmatpush3.bf16.msra.mxu0 %v1841_v5 }
  0xc4   : > { %1681 = vmatprep.subr.bf16.mxu0 %v1842_v8  ;;  %1704 = vmatpush3.bf16.msra.mxu1 %v1849_v25 }
  0xc5   : > { %830 = vmatmul.mubr.bf16.gmra.mrb[4].mxu0 %v514_v58  ;;  %1705 = vmatprep.subr.bf16.mxu1 %v1850_v26 }
  0xc6   : > { %895 = vmatmul.mubr.bf16.gmra.mrb[4].mxu1 %v516_v59  ;;  %837 = vmatprep.mubr.bf16.mxu0 %v519_v60 }
  0xc7   : > { %902 = vmatprep.mubr.bf16.mxu1 %v521_v61  ;;  %1682 = vmatpush3.bf16.msra.mxu0 %v1842_v8 }
  0xc8   : > { %1683 = vmatprep.subr.bf16.mxu0 %v1843_v19  ;;  %1706 = vmatpush3.bf16.msra.mxu1 %v1850_v26 }
  0xc9   : > { %1707 = vmatprep.subr.bf16.mxu1 %v1851_v27 }
  0xcb   : > { %1684 = vmatpush3.bf16.msra.mxu0 %v1843_v19 }
  0xcc   : > { %1685 = vmatprep.subr.bf16.mxu0 %v1844_v20  ;;  %1708 = vmatpush3.bf16.msra.mxu1 %v1851_v27 }
  0xcd   : > { %838 = vmatmul.mubr.bf16.gmra.mrb[8].mxu0 %v518_v9  ;;  %1709 = vmatprep.subr.bf16.mxu1 %v1852_v28 }
  0xce   : > { %903 = vmatmul.mubr.bf16.gmra.mrb[8].mxu1 %v520_v10  ;;  %845 = vmatprep.mubr.bf16.mxu0 %v523_v11 }
  0xcf   : > { %910 = vmatprep.mubr.bf16.mxu1 %v525_v12  ;;  %1686 = vmatpush3.bf16.msra.mxu0 %v1844_v20 }
  0xd0   : > { %1687 = vmatprep.subr.bf16.mxu0 %v1845_v21  ;;  %1710 = vmatpush3.bf16.msra.mxu1 %v1852_v28 }
  0xd1   : > { %1711 = vmatprep.subr.bf16.mxu1 %v1853_v29 }
  0xd3   : > { %1688 = vmatpush3.bf16.msra.mxu0 %v1845_v21 }
  0xd4   : > { %1689 = vmatprep.subr.bf16.mxu0 %v1846_v22  ;;  %1712 = vmatpush3.bf16.msra.mxu1 %v1853_v29 }
  0xd5   : > { %846 = vmatmul.mubr.bf16.gmra.mrb[12].mxu0 %v522_v17 }
  0xd6   : > { %911 = vmatmul.mubr.bf16.gmra.mrb[12].mxu1 %v524_v18 }
  0xd7   : > { %1690 = vmatpush3.bf16.msra.mxu0 %v1846_v22 }
  0xd8   : > { %1691 = vmatprep.subr.bf16.mxu0 %v1847_v23 }
  0xdb   : > { %1692 = vmatpush3.bf16.msra.mxu0 %v1847_v23 }
 0x190   : > { %v1589_v30 = vpop.f32.mrb[0].mxu0 }
 0x191   : > { %v1629_v31 = vpop.f32.mrb[0].mxu1  ;;  %v1590_v33 = vpop.f32.mrb[1].mxu0 }
 0x192   : > { %v1591_v34 = vadd.f32 %v1590_v33, %v1589_v30  ;;  %v1630_v35 = vpop.f32.mrb[1].mxu1  ;;  %v1592_v36 = vpop.f32.mrb[2].mxu0 }
 0x193   : > { %v1631_v37 = vadd.f32 %v1630_v35, %v1629_v31  ;;  %v1632_v38 = vpop.f32.mrb[2].mxu1  ;;  %v1593_v39 = vpop.f32.mrb[3].mxu0 }
 0x194   : > { %v824_v40 = vadd.f32 %v1591_v34, %v2476_v32  ;;  %v1594_v41 = vadd.f32 %v1593_v39, %v1592_v36  ;;  %v1633_v42 = vpop.f32.mrb[3].mxu1 }
 0x195   : > { %v1634_v43 = vadd.f32 %v1633_v42, %v1632_v38 }
 0x196   : > { %v889_v44 = vadd.f32 %v1631_v37, %v824_v40  ;;  %v827_v45 = vadd.f32 %v1594_v41, %v2476_v32 }
 0x198   : > { %v892_v46 = vadd.f32 %v1634_v43, %v827_v45  ;;  %v1595_v47 = vpop.f32.mrb[4].mxu0  ;;  %v919_v50 = vmax.f32 %v889_v44, 0.0  ;;  %v1854_v44 = vld [vmem:[%s2384_s18 + $0x30] sm:$0xff]   ;;  %v1855_v45 = vld [vmem:[%s2384_s18 + $0x38] sm:$0xff]   ;;  %s2076_s18 = smov [#allocation10]  }
 0x199   : > { %v1635_v48 = vpop.f32.mrb[4].mxu1  ;;  %v1596_v49 = vpop.f32.mrb[5].mxu0  ;;  %1713 = vmatprep.subr.bf16.mxu1 %v1854_v44  ;;  %s1980_s30 = sshll.u32 %s2076_s18, 4  ;;  %s1981_s30 = int_to_ptr.vmem [resolvable:$false] %s1980_s30 }
 0x19a   : > { %v920_v51 = vmax.f32 %v892_v46, 0.0  ;;  %v1597_v52 = vadd.f32 %v1596_v49, %v1595_v47  ;;  %v1636_v53 = vpop.f32.mrb[5].mxu1  ;;  %v1598_v54 = vpop.f32.mrb[6].mxu0  ;;  %1714 = vmatpush3.bf16.msra.mxu1 %v1854_v44  ;;  %v1506_v46 = vld [vmem:[%s472_s12] ss:$0 sm:$0xff]  ;;  %s1982_s13 = scalar_lea.vmem %s1981_s30, 1024  ;;  %p1983_p7 = scmp.lt.s32.totalorder %s2498_s17, %s1981_s30 }
 0x19b   : > { %v1637_v55 = vadd.f32 %v1636_v53, %v1635_v48  ;;  %v1638_v56 = vpop.f32.mrb[6].mxu1  ;;  %v1599_v57 = vpop.f32.mrb[7].mxu0  ;;  %1715 = vmatprep.subr.bf16.mxu1 %v1855_v45  ;;  %p1984_p3 = scmp.lt.s32.totalorder %s1982_s13, %s1976_s26 }
 0x19c   : > { %v832_v58 = vadd.f32 %v1597_v52, %v2476_v32  ;;  %v1600_v59 = vadd.f32 %v1599_v57, %v1598_v54  ;;  %v1639_v60 = vpop.f32.mrb[7].mxu1  ;;  %v927_v61 = vpack.c.bf16 %v920_v51, %v919_v50 }
 0x19d   : > { %v1640_v62 = vadd.f32 %v1639_v60, %v1638_v56  ;;  %p1985_p5 = por %p1984_p3, %p1983_p7 }
 0x19e   : > { %v897_v63 = vadd.f32 %v1637_v55, %v832_v58  ;;  %v835_v0 = vadd.f32 %v1600_v59, %v2476_v32  ;;  %1693 = vmatprep.mubr.bf16.mxu0 %v927_v61  ;;  %1716 = vmatpush3.bf16.msra.mxu1 %v1855_v45 }
 0x19f   : > { %p1986_p1 = pnand %p1985_p5, %p1979_p11 }
 0x1a0   : > { %v900_v1 = vadd.f32 %v1640_v62, %v835_v0  ;;  %v1601_v2 = vpop.f32.mrb[8].mxu0  ;;  %v921_v5 = vmax.f32 %v897_v63, 0.0 }
 0x1a1   : > { %v1641_v3 = vpop.f32.mrb[8].mxu1  ;;  %v1602_v4 = vpop.f32.mrb[9].mxu0 }
 0x1a2   : > { %v922_v6 = vmax.f32 %v900_v1, 0.0  ;;  %v1603_v7 = vadd.f32 %v1602_v4, %v1601_v2  ;;  %v1642_v8 = vpop.f32.mrb[9].mxu1  ;;  %v1604_v9 = vpop.f32.mrb[10].mxu0 }
 0x1a3   : > { %v1643_v10 = vadd.f32 %v1642_v8, %v1641_v3  ;;  %v1644_v11 = vpop.f32.mrb[10].mxu1  ;;  %v1605_v12 = vpop.f32.mrb[11].mxu0 }
 0x1a4   : > { %v928_v13 = vpack.c.bf16 %v922_v6, %v921_v5  ;;  %v840_v14 = vadd.f32 %v1603_v7, %v2476_v32  ;;  %v1606_v15 = vadd.f32 %v1605_v12, %v1604_v9  ;;  %v1645_v16 = vpop.f32.mrb[11].mxu1 }
 0x1a5   : > { %v1646_v17 = vadd.f32 %v1645_v16, %v1644_v11  ;;  %v1515_v11 = vld [vmem:[%s475_s16] ss:$0 sm:$0xff] }
 0x1a6   : > { %v905_v18 = vadd.f32 %v1643_v10, %v840_v14  ;;  %v843_v19 = vadd.f32 %v1606_v15, %v2476_v32  ;;  %1694 = vmatmul.mubr.bf16.vlgmr.msra.gmra.mrb[16].mxu0 %v928_v13 }
 0x1a8   : > { %v908_v20 = vadd.f32 %v1646_v17, %v843_v19  ;;  %v1607_v21 = vpop.f32.mrb[12].mxu0  ;;  %v923_v24 = vmax.f32 %v905_v18, 0.0 }
 0x1a9   : > { %v1647_v22 = vpop.f32.mrb[12].mxu1  ;;  %v1608_v23 = vpop.f32.mrb[13].mxu0 }
 0x1aa   : > { %v924_v25 = vmax.f32 %v908_v20, 0.0  ;;  %v1609_v26 = vadd.f32 %v1608_v23, %v1607_v21  ;;  %v1648_v27 = vpop.f32.mrb[13].mxu1  ;;  %v1610_v28 = vpop.f32.mrb[14].mxu0 }
 0x1ab   : > { %v1649_v29 = vadd.f32 %v1648_v27, %v1647_v22  ;;  %v1650_v30 = vpop.f32.mrb[14].mxu1  ;;  %v1611_v31 = vpop.f32.mrb[15].mxu0 }
 0x1ac   : > { %v848_v33 = vadd.f32 %v1609_v26, %v2476_v32  ;;  %v1612_v34 = vadd.f32 %v1611_v31, %v1610_v28  ;;  %v1651_v35 = vpop.f32.mrb[15].mxu1  ;;  %v929_v36 = vpack.c.bf16 %v924_v25, %v923_v24 }
 0x1ad   : > { %v1652_v37 = vadd.f32 %v1651_v35, %v1650_v30 }
 0x1ae   : > { %v913_v38 = vadd.f32 %v1649_v29, %v848_v33  ;;  %v851_v39 = vadd.f32 %v1612_v34, %v2476_v32  ;;  %1697 = vmatprep.mubr.bf16.mxu0 %v929_v36 }
 0x1b0   : > { %v916_v40 = vadd.f32 %v1652_v37, %v851_v39  ;;  %v925_v41 = vmax.f32 %v913_v38, 0.0 }
 0x1b2   : > { %v926_v42 = vmax.f32 %v916_v40, 0.0 }
 0x1b4   : > { %v930_v43 = vpack.c.bf16 %v926_v42, %v925_v41 }
 0x1b6   : > { %1698 = vmatmul.mubr.bf16.gmra.mrb[20].mxu0 %v930_v43 }
 0x279   : > { %v1695_v47 = vpop.f32.mrb[16].mxu0 }
 0x27a   : > { %v1045_v48 = vadd.f32 %v1695_v47, %v1506_v46  ;;  %v1036_v32 = vpop.f32.mrb[17].mxu0 }
 0x27b   : > { %v1037_v49 = vadd.f32 %v1506_v46, %v1036_v32  ;;  %v1696_v50 = vpop.f32.mrb[18].mxu0 }
 0x27c   : > { %v1048_v51 = vadd.f32 %v1696_v50, %v1506_v46  ;;  %v1039_v52 = vpop.f32.mrb[19].mxu0  ;;  %v1069_v54 = vmax.f32 %v1045_v48, 0.0 }
 0x27d   : > { %v1040_v53 = vadd.f32 %v1506_v46, %v1039_v52  ;;  %v1067_v56 = vmax.f32 %v1037_v49, 0.0 }
 0x27e   : > { %v1070_v55 = vmax.f32 %v1048_v51, 0.0 }
 0x27f   : > { %v1068_v57 = vmax.f32 %v1040_v53, 0.0 }
 0x280   : > { %v1076_v58 = vpack.c.bf16 %v1070_v55, %v1069_v54 }
 0x281   : > { %v1075_v59 = vpack.c.bf16 %v1068_v57, %v1067_v56 }
 0x283   : > { %1717 = vmatprep.mubr.bf16.mxu1 %v1075_v59 }
 0x284   : > { %1718 = vmatmul.mubr.bf16.vlgmr.msra.gmra.mrb[16].mxu1 %v1076_v58 }
 0x289   : > { %v1699_v60 = vpop.f32.mrb[20].mxu0 }
 0x28a   : > { %v1061_v61 = vadd.f32 %v1699_v60, %v1506_v46  ;;  %v1052_v62 = vpop.f32.mrb[21].mxu0 }
 0x28b   : > { %v1053_v63 = vadd.f32 %v1506_v46, %v1052_v62  ;;  %v1700_v0 = vpop.f32.mrb[22].mxu0 }
 0x28c   : > { %v1064_v1 = vadd.f32 %v1700_v0, %v1506_v46  ;;  %v1055_v2 = vpop.f32.mrb[23].mxu0  ;;  %v1073_v4 = vmax.f32 %v1061_v61, 0.0 }
 0x28d   : > { %v1056_v3 = vadd.f32 %v1506_v46, %v1055_v2  ;;  %v1071_v6 = vmax.f32 %v1053_v63, 0.0 }
 0x28e   : > { %v1074_v5 = vmax.f32 %v1064_v1, 0.0 }
 0x28f   : > { %v1072_v7 = vmax.f32 %v1056_v3, 0.0 }
 0x290   : > { %v1078_v8 = vpack.c.bf16 %v1074_v5, %v1073_v4 }
 0x291   : > { %v1077_v9 = vpack.c.bf16 %v1072_v7, %v1071_v6 }
 0x293   : > { %1721 = vmatprep.mubr.bf16.mxu1 %v1077_v9 }
 0x294   : > { %1722 = vmatmul.mubr.bf16.gmra.mrb[20].mxu1 %v1078_v8 }
 0x357   : > { %v1719_v10 = vpop.f32.mrb[16].mxu1 }
 0x358   : > { %v1184_v12 = vpop.f32.mrb[17].mxu1  ;;  %v1193_v14 = vadd.f32 %v1719_v10, %v1515_v11 }
 0x359   : > { %v1720_v13 = vpop.f32.mrb[18].mxu1  ;;  %v1185_v17 = vadd.f32 %v1515_v11, %v1184_v12 }
 0x35a   : > { %v1196_v15 = vadd.f32 %v1720_v13, %v1515_v11  ;;  %v1187_v16 = vpop.f32.mrb[19].mxu1 }
 0x35b   : > { %v1188_v18 = vadd.f32 %v1515_v11, %v1187_v16 }
 0x35c   : > { %v1558_v19 = vpack.c.bf16 %v1196_v15, %v1193_v14 }
 0x35d   : > { %v1553_v20 = vpack.c.bf16 %v1188_v18, %v1185_v17 }
 0x35e   : > { %1570 = vst [vmem:[%s465_s20 + $0x8] sm:$0xff] %v1558_v19  }
 0x35f   : > { %1554 = vst [vmem:[%s465_s20] sm:$0xff] %v1553_v20  }
 0x367   : > { %v1723_v21 = vpop.f32.mrb[20].mxu1 }
 0x368   : > { %v1200_v22 = vpop.f32.mrb[21].mxu1  ;;  %v1209_v24 = vadd.f32 %v1723_v21, %v1515_v11 }
 0x369   : > { %v1724_v23 = vpop.f32.mrb[22].mxu1  ;;  %v1201_v27 = vadd.f32 %v1515_v11, %v1200_v22 }
 0x36a   : > { %v1212_v25 = vadd.f32 %v1724_v23, %v1515_v11  ;;  %v1203_v26 = vpop.f32.mrb[23].mxu1 }
 0x36b   : > { %v1204_v28 = vadd.f32 %v1515_v11, %v1203_v26 }
 0x36c   : > { %v1568_v29 = vpack.c.bf16 %v1212_v25, %v1209_v24 }
 0x36d   : > { %v1563_v30 = vpack.c.bf16 %v1204_v28, %v1201_v27 }
 0x36e   : > { %1572 = vst [vmem:[%s465_s20 + $0x18] sm:$0xff] %v1568_v29  }
 0x36f   : > { %1571 = vst [vmem:[%s465_s20 + $0x10] sm:$0xff] %v1563_v30  }
 0x370   : > { %1989 = shalt.err (!%p1986_p1)
}
 0x371   : > { %s1990_s23 = scalar_lea.hbm %s2503_s21, 512  ;;  %s1994_s22 = scalar_lea.hbm %s2559_s7, 1024 }
 0x372   : > { %p1991_p6 = scmp.ne.s32.totalorder %s2503_s21, %s1990_s23  ;;  %p1995_p2 = scmp.lt.u32.totalorder %s2503_s21, %s2559_s7 }
 0x373   : > { %p1996_p8 = scmp.lt.u32.totalorder %s1994_s22, %s1990_s23  ;;  %p1998_p4 = scmp.lt.u32.totalorder %s1990_s23, %s2503_s21 }
 0x374   : > { %p1992_p9 = pnand %p1991_p6, %p2595_p10 }
 0x375   : > { %p1997_p0 = por %p1996_p8, %p1995_p2 }
 0x376   : > { %p1993_p12 = pneg %p1992_p9 }
 0x377   : > { %p1999_p13 = por %p1998_p4, %p1997_p0 }
 0x379   : > { %p2000_p11 = pnand %p1999_p13, %p1993_p12 }
 0x37b   : > { %2003 = shalt.err (!%p2000_p11)
}
 0x37c   : > { %s2077_s0 = smov 64   ;;  %s2078_s16 = smov 4  }
 0x37d   : > { %1733 = dma.vmem_to_hbm [thread:$0]  (%p2595_p10), %s2498_s17, 512, %s2503_s21, %s1256_s27, %s2077_s0, %s2077_s0, %s2078_s16  }
 0x37e PF: > { %s2596_s11 = sld [smem:[#allocation19_spill]]  ;;  %s2597_s20 = sld [smem:[#allocation16_spill]] }
 0x37f   : > { %s1286_s10 = sand.u32 1, %s2046_s24  }
 0x380   : > { %s1287_s29 = scalar_lea.sflag [#allocation4], %s1286_s10 }
 0x384   : > { %p2598_p7 = scmp.ne.s32.totalorder %s2596_s11, 0  ;;  %p2599_p3 = scmp.ge.s32.totalorder %s2597_s20, 2 }
 0x386   : > { %p1749_p5 = pnand %p2599_p3, %p2598_p7 }
 0x388   : > { %2041 = dma.done.wait (!%p1749_p5), %s1287_s29, 512  }
 0x389   : > { %2043 = vsyncadd (!%p1749_p5), %s1287_s29, 4294966784  ;;  %s29_s29 = sadd.s32 1, %s2597_s20   ;;  %s2600_s19 = sld [smem:[#allocation15_spill]] }
 0x38a   : > { %p26_p1 = scmp.ge.s32.totalorder %s29_s29, 4   ;;  %s2601_s26 = sld [smem:[#allocation18_spill]] }
 0x38b   : > { %s2602_s14 = sld [smem:[#allocation17_spill]]  ;;  %s2603_s24 = smov %s2050_s25 }
 0x38c   : > { %s2605_s27 = smov %s2062_s28  ;;  %28 = sbr.rel (!%p26_p1) target bundleno = 13 (0xd), region = 139 }
 0x38f   : > { %s2604_s25 = smov %s2600_s19 }
 0x391   : > { %s2606_s28 = smov %s2602_s14 }
 0x393   :  { %1292 = vsyncpa [#allocation3], 1 }
 0x394   :  { %1294 = vsyncpa [#allocation3 + $0x1], 1 }
 0x395   :  { %1295 = vsyncpa [#allocation6], 1 }
 0x396   :  { %1297 = vsyncpa [#allocation6 + $0x1], 1 }
 0x397   :  { %1298 = vsyncpa [#allocation9], 1 }
 0x398   :  { %1300 = vsyncpa [#allocation9 + $0x1], 1 }
 0x399   :  { %1301 = vsyncpa [#allocation4], 1 }
 0x39a   :  { %1303 = vsyncpa [#allocation4 + $0x1], 1 }

</bundles_post_ra>
